<compile_context>
chip_gen: v7x
topology: tpu7x:2x2x1
jax: 0.10.0
libtpu: 0.0.40
codegen_flags: <defaults>
</compile_context>

<pallas_src>
import functools

import jax
import jax.numpy as jnp
from jax.experimental import pallas as pl
from jax.experimental.pallas import tpu as pltpu

LOG_STD_MAX = 2.0
LOG_STD_MIN = -10.0


def _policy_kernel(n_layers, d_action, s_ref, w_ref, c_ref, mean_ref, std_ref):
    """Packed-operand policy forward.

    s_ref    : [batch, C]            zero-padded input state
    w_ref    : [n_layers, C, C]      zero-padded stacked weights (y = x @ W)
    c_ref    : [n_layers + 2, C]     rows 0..n_layers-1 = biases,
                                     row n_layers     = padded action_scale,
                                     row n_layers + 1 = padded action_bias
    mean_ref : [batch, d_action]
    std_ref  : [batch, d_action]
    """
    h = s_ref[...]
    for i in range(n_layers):                        # static, fully unrolled
        w = w_ref[i]                                 # [C, C]  (static index, free)
        b = c_ref[pl.ds(i, 1), :]                    # [1, C]  one sublane row
        # Default matmul precision is enough for the 1e-5 check at these
        # magnitudes; pin precision=HIGHEST only if weights/activations grow.
        h = jnp.dot(h, w, preferred_element_type=jnp.float32) + b
        if i < n_layers - 1:                         # ReLU on all but the head
            h = jnp.maximum(h, 0.0)

    scale = c_ref[pl.ds(n_layers, 1), :]             # [1, C] (zeros past d_action)
    bias = c_ref[pl.ds(n_layers + 1, 1), :]          # [1, C]

    # Both branches computed on the full lane-0-aligned [batch, C] tile
    # (tanh/exp are EUP ops, mul/add/clip are VPU); the mean slice is
    # lane-0-aligned, the std slice is a tiny static lane shift (XLU slot,
    # free filler in a latency-bound kernel).
    mean_full = jnp.tanh(h) * scale + bias
    std_full = jnp.exp(jnp.clip(h, LOG_STD_MIN, LOG_STD_MAX))

    mean_ref[...] = mean_full[:, :d_action]
    std_ref[...] = std_full[:, d_action:2 * d_action]


def pack_policy_params(params, action_scale, action_bias, d_state):
    """Pack parameters ONCE per parameter set (hoisted off the per-call path).

    params: list of (W, b) with W:[din, dout], b:[1, dout].
    Returns (w_all [n_layers, C, C], consts [n_layers+2, C], C, d_action, n_layers).

    Zero padding is exact: padded activation lanes stay 0 through every layer
    because padded weight rows/cols and padded bias lanes are 0.  Preserve this
    invariant if refactoring.
    """
    d_action = action_scale.shape[-1]
    n_layers = len(params)
    d_hidden = params[0][0].shape[-1]
    C = max(d_state, d_hidden, 2 * d_action)   # do NOT pad to 128 (see header)

    w_stack, const_rows = [], []
    for w, b in params:
        wp = jnp.zeros((C, C), jnp.float32).at[: w.shape[0], : w.shape[1]].set(w)
        bp = jnp.zeros((C,), jnp.float32).at[: b.shape[-1]].set(b.reshape(-1))
        w_stack.append(wp)
        const_rows.append(bp)

    scale_row = jnp.zeros((C,), jnp.float32).at[:d_action].set(action_scale.reshape(-1))
    bias_row = jnp.zeros((C,), jnp.float32).at[:d_action].set(action_bias.reshape(-1))

    w_all = jnp.stack(w_stack, axis=0)                           # [n_layers, C, C]
    consts = jnp.stack(const_rows + [scale_row, bias_row], 0)    # [n_layers+2, C]
    return w_all, consts, C, d_action, n_layers


def make_policy_forward(d_state, d_action, n_layers, C):
    """Build the jitted per-call forward: pad (no-op if d_state==C) + pallas_call."""
    vmem = pl.BlockSpec(memory_space=pltpu.MemorySpace.VMEM)
    kernel = functools.partial(_policy_kernel, n_layers, d_action)

    @jax.jit
    def forward(s, w_all, consts):
        batch = s.shape[0]
        s_pad = s if s.shape[-1] == C else jnp.pad(s, ((0, 0), (0, C - s.shape[-1])))
        mean, std = pl.pallas_call(
            kernel,
            out_shape=(
                jax.ShapeDtypeStruct((batch, d_action), jnp.float32),
                jax.ShapeDtypeStruct((batch, d_action), jnp.float32),
            ),
            in_specs=[vmem, vmem, vmem],
            out_specs=(vmem, vmem),
        )(s_pad, w_all, consts)
        return mean, std

    return forward


def _init_linear(key, fan_in, fan_out):
    """Deterministic PyTorch-style Linear init: U(-1/sqrt(fan_in), 1/sqrt(fan_in))."""
    kw, kb = jax.random.split(key)
    bound = 1.0 / jnp.sqrt(jnp.float32(fan_in))
    w = jax.random.uniform(kw, (fan_in, fan_out), jnp.float32, -bound, bound)
    b = jax.random.uniform(kb, (1, fan_out), jnp.float32, -bound, bound)
    return w, b


def build_policy_params(key, d_state, d_action, d_hidden, n_hidden):
    """createMLP(dIn=d_state, dHidden, nHidden, dOut=2*d_action):
    Linear(dState,dH)+ReLU, [Linear(dH,dH)+ReLU]*(nHidden-1), Linear(dH, 2*dAction)."""
    dims = [d_state] + [d_hidden] * n_hidden + [2 * d_action]
    params = []
    for i in range(len(dims) - 1):
        key, sub = jax.random.split(key)
        params.append(_init_linear(sub, dims[i], dims[i + 1]))
    return params


def reference_forward(s, params, action_scale, action_bias):
    h = s
    for i, (w, b) in enumerate(params):
        h = h @ w + b
        if i < len(params) - 1:
            h = jnp.maximum(h, 0.0)
    d_action = action_scale.shape[-1]
    mean = jnp.tanh(h[:, :d_action]) * action_scale + action_bias
    log_std = jnp.clip(h[:, d_action:], LOG_STD_MIN, LOG_STD_MAX)
    return mean, jnp.exp(log_std)


if __name__ == "__main__":
    # Small shapes implied by the module's forward: s is [batch, dState].
    batch, d_state, d_action, d_hidden, n_hidden = 8, 32, 4, 32, 2

    key = jax.random.PRNGKey(0)
    k_s, k_p = jax.random.split(key)

    s = jax.random.normal(k_s, (batch, d_state), jnp.float32)
    params = build_policy_params(k_p, d_state, d_action, d_hidden, n_hidden)

    # action_space = {'high': high, 'low': low} -> scale/bias buffers, shape [1, dAction]
    high = jnp.linspace(0.5, 2.0, d_action, dtype=jnp.float32)[None, :]
    low = -jnp.ones((1, d_action), jnp.float32)
    action_scale = (high - low) / 2.0
    action_bias = (high + low) / 2.0

    # Pack ONCE per parameter set; the per-call path is only the pallas_call.
    w_all, consts, C, _, n_layers = pack_policy_params(
        params, action_scale, action_bias, d_state)
    policy_forward = make_policy_forward(d_state, d_action, n_layers, C)

    mean, std = policy_forward(s, w_all, consts)
    jax.block_until_ready((mean, std))

    mean_ref, std_ref = reference_forward(s, params, action_scale, action_bias)
    assert jnp.allclose(mean, mean_ref, atol=1e-5, rtol=1e-5)
    assert jnp.allclose(std, std_ref, atol=1e-5, rtol=1e-5)

    # TODO(synk): TanhNormal distribution object (rsample / log_prob) is host-side
    # sampling machinery; the kernel returns the (mean, std) parameters only.
    print("KERNEL_OK")
</pallas_src>

<mosaic_0001>
module attributes {stable_mosaic.version = 11 : i64} {
  func.func @_policy_kernel(%arg0: memref<8x32xf32, #tpu.memory_space<vmem>>, %arg1: memref<3x32x32xf32, #tpu.memory_space<vmem>>, %arg2: memref<5x32xf32, #tpu.memory_space<vmem>>, %arg3: memref<8x4xf32, #tpu.memory_space<vmem>>, %arg4: memref<8x4xf32, #tpu.memory_space<vmem>>) attributes {dimension_semantics = [], scalar_prefetch = 0 : i64, scratch_operands = 0 : i64, tpu.core_type = #tpu.core_type<tc>} {
    %c0 = arith.constant 0 : index
    %c0_0 = arith.constant 0 : index
    %0 = vector.load %arg0[%c0, %c0_0] : memref<8x32xf32, #tpu.memory_space<vmem>>, vector<8x32xf32>
    %c0_1 = arith.constant 0 : index
    %c0_2 = arith.constant 0 : index
    %c0_3 = arith.constant 0 : index
    %1 = vector.load %arg1[%c0_1, %c0_2, %c0_3] : memref<3x32x32xf32, #tpu.memory_space<vmem>>, vector<1x32x32xf32>
    %2 = vector.shape_cast %1 : vector<1x32x32xf32> to vector<32x32xf32>
    %c0_4 = arith.constant 0 : index
    %c0_5 = arith.constant 0 : index
    %3 = vector.load %arg2[%c0_4, %c0_5] : memref<5x32xf32, #tpu.memory_space<vmem>>, vector<1x32xf32>
    %cst = arith.constant dense<0.000000e+00> : vector<8x32xf32>
    %4 = tpu.matmul %0, %2, %cst {dimension_numbers = #tpu.dot_dimension_numbers<[1], [0], [0], [1], [0, 0, 1, 1], [], []>} : vector<8x32xf32>, vector<32x32xf32>, vector<8x32xf32> -> vector<8x32xf32>
    %5 = vector.broadcast %3 : vector<1x32xf32> to vector<8x32xf32>
    %6 = arith.addf %4, %5 : vector<8x32xf32>
    %cst_6 = arith.constant 0.000000e+00 : f32
    %7 = vector.broadcast %cst_6 : f32 to vector<8x32xf32>
    %8 = arith.maximumf %6, %7 : vector<8x32xf32>
    %c1 = arith.constant 1 : index
    %c0_7 = arith.constant 0 : index
    %c0_8 = arith.constant 0 : index
    %9 = vector.load %arg1[%c1, %c0_7, %c0_8] : memref<3x32x32xf32, #tpu.memory_space<vmem>>, vector<1x32x32xf32>
    %10 = vector.shape_cast %9 : vector<1x32x32xf32> to vector<32x32xf32>
    %c1_9 = arith.constant 1 : index
    %c0_10 = arith.constant 0 : index
    %11 = vector.load %arg2[%c1_9, %c0_10] : memref<5x32xf32, #tpu.memory_space<vmem>>, vector<1x32xf32>
    %cst_11 = arith.constant dense<0.000000e+00> : vector<8x32xf32>
    %12 = tpu.matmul %8, %10, %cst_11 {dimension_numbers = #tpu.dot_dimension_numbers<[1], [0], [0], [1], [0, 0, 1, 1], [], []>} : vector<8x32xf32>, vector<32x32xf32>, vector<8x32xf32> -> vector<8x32xf32>
    %13 = vector.broadcast %11 : vector<1x32xf32> to vector<8x32xf32>
    %14 = arith.addf %12, %13 : vector<8x32xf32>
    %cst_12 = arith.constant 0.000000e+00 : f32
    %15 = vector.broadcast %cst_12 : f32 to vector<8x32xf32>
    %16 = arith.maximumf %14, %15 : vector<8x32xf32>
    %c2 = arith.constant 2 : index
    %c0_13 = arith.constant 0 : index
    %c0_14 = arith.constant 0 : index
    %17 = vector.load %arg1[%c2, %c0_13, %c0_14] : memref<3x32x32xf32, #tpu.memory_space<vmem>>, vector<1x32x32xf32>
    %18 = vector.shape_cast %17 : vector<1x32x32xf32> to vector<32x32xf32>
    %c2_15 = arith.constant 2 : index
    %c0_16 = arith.constant 0 : index
    %19 = vector.load %arg2[%c2_15, %c0_16] : memref<5x32xf32, #tpu.memory_space<vmem>>, vector<1x32xf32>
    %cst_17 = arith.constant dense<0.000000e+00> : vector<8x32xf32>
    %20 = tpu.matmul %16, %18, %cst_17 {dimension_numbers = #tpu.dot_dimension_numbers<[1], [0], [0], [1], [0, 0, 1, 1], [], []>} : vector<8x32xf32>, vector<32x32xf32>, vector<8x32xf32> -> vector<8x32xf32>
    %21 = vector.broadcast %19 : vector<1x32xf32> to vector<8x32xf32>
    %22 = arith.addf %20, %21 : vector<8x32xf32>
    %c3 = arith.constant 3 : index
    %c0_18 = arith.constant 0 : index
    %23 = vector.load %arg2[%c3, %c0_18] : memref<5x32xf32, #tpu.memory_space<vmem>>, vector<1x32xf32>
    %c4 = arith.constant 4 : index
    %c0_19 = arith.constant 0 : index
    %24 = vector.load %arg2[%c4, %c0_19] : memref<5x32xf32, #tpu.memory_space<vmem>>, vector<1x32xf32>
    %25 = math.tanh %22 : vector<8x32xf32>
    %26 = vector.broadcast %23 : vector<1x32xf32> to vector<8x32xf32>
    %27 = arith.mulf %25, %26 : vector<8x32xf32>
    %28 = vector.broadcast %24 : vector<1x32xf32> to vector<8x32xf32>
    %29 = arith.addf %27, %28 : vector<8x32xf32>
    %cst_20 = arith.constant -1.000000e+01 : f32
    %cst_21 = arith.constant 2.000000e+00 : f32
    %30 = vector.broadcast %cst_20 : f32 to vector<8x32xf32>
    %31 = arith.maximumf %30, %22 : vector<8x32xf32>
    %32 = vector.broadcast %cst_21 : f32 to vector<8x32xf32>
    %33 = arith.minimumf %32, %31 : vector<8x32xf32>
    %34 = math.exp %33 : vector<8x32xf32>
    %35 = vector.extract_strided_slice %29 {offsets = [0, 0], sizes = [8, 4], strides = [1, 1]} : vector<8x32xf32> to vector<8x4xf32>
    %c0_22 = arith.constant 0 : index
    %c0_23 = arith.constant 0 : index
    %36 = vector.load %arg3[%c0_22, %c0_23] : memref<8x4xf32, #tpu.memory_space<vmem>>, vector<8x4xf32>
    tpu.vector_store %arg3[%c0_22, %c0_23], %35 {strides = array<i32>} : memref<8x4xf32, #tpu.memory_space<vmem>>, vector<8x4xf32>,
    %37 = vector.extract_strided_slice %34 {offsets = [0, 4], sizes = [8, 4], strides = [1, 1]} : vector<8x32xf32> to vector<8x4xf32>
    %c0_24 = arith.constant 0 : index
    %c0_25 = arith.constant 0 : index
    %38 = vector.load %arg4[%c0_24, %c0_25] : memref<8x4xf32, #tpu.memory_space<vmem>>, vector<8x4xf32>
    tpu.vector_store %arg4[%c0_24, %c0_25], %37 {strides = array<i32>} : memref<8x4xf32, #tpu.memory_space<vmem>>, vector<8x4xf32>,
    return
  }
}

</mosaic_0001>

<bundles_post_ra>
// kernel: forward.1
= control target key start
LH: loop header
LB: loop body
LE: loop exit
PB: predicated region body
PF: predicated region fallthrough
CT: control target
= control target key end

     0   :  { %10 = vsyncpa [#allocation3], 0  ;;  %s578_s0 = inlined_call_operand.hbm [shape: f32[8,32], index: 0, kind: input, shape index: {}]   ;;  %s579_s1 = inlined_call_operand.hbm [shape: f32[3,32,32], index: 1, kind: input, shape index: {}]   ;;  %s580_s2 = inlined_call_operand.hbm [shape: f32[5,32], index: 2, kind: input, shape index: {}]   ;;  %s581_s3 = inlined_call_operand.vmem [shape: f32[8,4], index: 3, kind: output, shape index: {0}]   ;;  %s582_s4 = inlined_call_operand.vmem [shape: f32[8,4], index: 4, kind: output, shape index: {1}]  }
   0x1   :  { %11 = vsyncpa [#allocation5], 0  ;;  %s496_s15 = smov [#allocation4]   ;;  %s426_s19 = scalar_lea.hbm %s579_s1, 1536 }
   0x2   :  { %s27_s16 = sshll.u32 %s496_s15, 4  ;;  %p427_p0 = scmp.ne.s32.totalorder %s579_s1, %s426_s19  ;;  %s28_s16 = int_to_ptr.vmem [resolvable:$true] %s27_s16 }
   0x3   :  { %p430_p1 = scmp.lt.u32.totalorder %s426_s19, %s579_s1 }
   0x5   :  { %p432_p2 = pnand %p430_p1, %p427_p0 }
   0x7   :  { %435 = shalt.err (!%p432_p2)
}
   0x8   :  { %s436_s24 = scalar_lea.vmem %s28_s16, 1536  ;;  %p441_p4 = scmp.lt.s32.totalorder %s28_s16, %s28_s16 }
   0x9   :  { %p437_p3 = scmp.ne.s32.totalorder %s28_s16, %s436_s24  ;;  %p442_p5 = scmp.lt.s32.totalorder %s436_s24, %s436_s24 }
   0xb   :  { %p443_p6 = por %p442_p5, %p441_p4 }
   0xd   :  { %p444_p7 = pnand %p443_p6, %p437_p3 }
   0xf   :  { %447 = shalt.err (!%p444_p7)
}
  0x10   :  { %s497_s25 = smov 128   ;;  %s498_s26 = smov 8  }
  0x11   :  { %33 = dma.hbm_to_vmem [thread:$0]  %s579_s1, 1536, %s28_s16, [#allocation5], %s497_s25, %s497_s25, %s498_s26  }
  0x12   :  { %s499_s29 = smov [#allocation2]   ;;  %s500_s5 = smov [#allocation6]  }
  0x13   :  { %s18_s30 = sshll.u32 %s499_s29, 4  ;;  %s40_s6 = sshll.u32 %s500_s5, 4  ;;  %s19_s30 = int_to_ptr.vmem [resolvable:$true] %s18_s30  ;;  %s41_s6 = int_to_ptr.vmem [resolvable:$true] %s40_s6 }
  0x14   :  { %s448_s9 = scalar_lea.hbm %s578_s0, 128 }
  0x15   :  { %p449_p8 = scmp.ne.s32.totalorder %s578_s0, %s448_s9  ;;  %p452_p9 = scmp.lt.u32.totalorder %s448_s9, %s578_s0 }
  0x17   :  { %p454_p10 = pnand %p452_p9, %p449_p8 }
  0x19   :  { %457 = shalt.err (!%p454_p10)
}
  0x1a   :  { %s458_s1 = scalar_lea.vmem %s19_s30, 128  ;;  %p463_p12 = scmp.lt.s32.totalorder %s19_s30, %s19_s30 }
  0x1b   :  { %p459_p11 = scmp.ne.s32.totalorder %s19_s30, %s458_s1  ;;  %p464_p13 = scmp.lt.s32.totalorder %s458_s1, %s458_s1 }
  0x1d   :  { %p465_p0 = por %p464_p13, %p463_p12 }
  0x1f   :  { %p466_p1 = pnand %p465_p0, %p459_p11 }
  0x21   :  { %469 = shalt.err (!%p466_p1)
}
  0x22   :  { %21 = dma.hbm_to_vmem [thread:$0]  %s578_s0, 128, %s19_s30, [#allocation3]  }
  0x23   :  { %s470_s18 = scalar_lea.hbm %s580_s2, 128 }
  0x24   :  { %p471_p2 = scmp.ne.s32.totalorder %s580_s2, %s470_s18  ;;  %p474_p3 = scmp.lt.u32.totalorder %s470_s18, %s580_s2 }
  0x26   :  { %p476_p4 = pnand %p474_p3, %p471_p2 }
  0x28   :  { %479 = shalt.err (!%p476_p4)
}
  0x29   :  { %s480_s23 = scalar_lea.vmem %s41_s6, 128  ;;  %p485_p6 = scmp.lt.s32.totalorder %s41_s6, %s41_s6 }
  0x2a   :  { %p481_p5 = scmp.ne.s32.totalorder %s41_s6, %s480_s23  ;;  %p486_p7 = scmp.lt.s32.totalorder %s480_s23, %s480_s23 }
  0x2c   :  { %p487_p8 = por %p486_p7, %p485_p6 }
  0x2e   :  { %p488_p9 = pnand %p487_p8, %p481_p5 }
  0x30   :  { %491 = shalt.err (!%p488_p9)
}
  0x31   :  { %43 = dma.hbm_to_vmem [thread:$0]  %s580_s2, 128, %s41_s6, [#allocation5]  }
  0x32   :  { %492 = dma.done.wait [#allocation3], 128  }
  0x33   :  { %493 = vsyncadd [#allocation3], 4294967168 }
  0x34   :  { %494 = dma.done.wait [#allocation5], 1664  }
  0x35   :  { %495 = vsyncadd [#allocation5], 4294965632  ;;  %v501_v0 = vmov 0.0|0.0   ;;  %vm502_vm0 = vmmov 0   ;;  %v503_v1 = vmov 0.0   ;;  %v54_v2 = vld [vmem:[#allocation4] sm:$0xff] }
  0x36   :  { %395 = vmatprep.subr.bf16.mxu0 %v501_v0  ;;  %370 = vmatprep.mubr.msk.f32.mxu0 %vm502_vm0, %v503_v1  ;;  %v55_v3 = vld [vmem:[#allocation4 + $0x8] sm:$0xff]  ;;  %v56_v4 = vld [vmem:[#allocation4 + $0x10] sm:$0xff]  ;;  %v57_v6 = vld [vmem:[#allocation4 + $0x18] sm:$0xff]  ;;  %vm63_vm1 = vcmask 261120   ;;  %vm322_vm2 = vcmask 31744   ;;  %s504_s26 = smov 124  }
  0x37   :  { %401 = vmatprep.subr.bf16.mxu1 %v501_v0  ;;  %381 = vmatprep.mubr.msk.f32.mxu1 %vm502_vm0, %v503_v1  ;;  %v396_v5 = vpack.c.bf16 %v55_v3, %v54_v2  ;;  %v139_v7 = vld [vmem:[#allocation4 + $0x20] sm:$0xff]  ;;  %v140_v8 = vld [vmem:[#allocation4 + $0x28] sm:$0xff]  ;;  %v399_v9 = vpack.c.bf16 %v57_v6, %v56_v4  ;;  %v53_v11 = vld [vmem:[#allocation2] sm:$0xff] }
  0x38   :  { %v402_v10 = vpack.c.bf16 %v140_v8, %v139_v7  ;;  %v141_v12 = vld [vmem:[#allocation4 + $0x30] sm:$0xff]  ;;  %v142_v13 = vld [vmem:[#allocation4 + $0x38] sm:$0xff]  ;;  %v223_v15 = vld [vmem:[#allocation4 + $0x40] sm:$0xff] }
  0x39   :  { %397 = vmatpush3.bf16.msra.mxu0 %v396_v5  ;;  %v405_v14 = vpack.c.bf16 %v142_v13, %v141_v12  ;;  %v224_v16 = vld [vmem:[#allocation4 + $0x48] sm:$0xff]  ;;  %v339_v18 = vld [vmem:[#allocation6] ss:$0 sm:$0xff]  ;;  %v225_v23 = vld [vmem:[#allocation4 + $0x50] sm:$0xff] }
  0x3a   :  { %398 = vmatprep.subr.bf16.mxu0 %v501_v0  ;;  %403 = vmatpush3.bf16.msra.mxu1 %v402_v10  ;;  %v408_v17 = vpack.c.bf16 %v224_v16, %v223_v15  ;;  %v226_v24 = vld [vmem:[#allocation4 + $0x58] sm:$0xff]  ;;  %v341_v26 = vld [vmem:[#allocation6 + $0x1] ss:$0 sm:$0xff]  ;;  %v343_v31 = vld [vmem:[#allocation6 + $0x2] ss:$0 sm:$0xff] }
  0x3b   :  { %404 = vmatprep.subr.bf16.mxu1 %v501_v0  ;;  %v411_v25 = vpack.c.bf16 %v226_v24, %v225_v23  ;;  %v345_v38 = vld [vmem:[#allocation6 + $0x3] ss:$0 sm:$0xff]  ;;  %v346_v40 = vld [vmem:[#allocation6 + $0x4] ss:$0 sm:$0xff] }
  0x3d   :  { %400 = vmatpush3.bf16.msra.mxu0 %v399_v9 }
  0x3e   :  { %407 = vmatprep.subr.bf16.mxu0 %v501_v0  ;;  %406 = vmatpush3.bf16.msra.mxu1 %v405_v14 }
  0x40   :  { %371 = vmatmul.mubr.msk.f32.vlgmr.msra.gmra.mrb[0].mxu0 %vm63_vm1, %v53_v11 }
  0x41   :  { %392 = vmatprep.mubr.msk.f32.mxu0 %vm502_vm0, %v503_v1  ;;  %409 = vmatpush3.bf16.msra.mxu0 %v408_v17 }
  0x42   :  { %410 = vmatprep.subr.bf16.mxu0 %v501_v0 }
  0x45   :  { %412 = vmatpush3.bf16.msra.mxu0 %v411_v25 }
 0x113   :  { %v133_v19 = vpop.f32.mrb[0].mxu0 }
 0x114   :  { %v134_v20 = vadd.f32 %v339_v18, %v133_v19  ;;  %v372_v21 = vpop.f32.mrb[1].mxu0 }
 0x116   :  { %v137_v22 = vmax.f32 %v134_v20, 0.0 }
 0x118   :  { %382 = vmatmul.mubr.msk.f32.vlgmr.msra.gmra.mrb[0].mxu1 %vm63_vm1, %v137_v22 }
 0x1eb   :  { %v217_v27 = vpop.f32.mrb[0].mxu1 }
 0x1ec   :  { %v218_v28 = vadd.f32 %v341_v26, %v217_v27  ;;  %v383_v29 = vpop.f32.mrb[1].mxu1 }
 0x1ee   :  { %v221_v30 = vmax.f32 %v218_v28, 0.0 }
 0x1f0   :  { %393 = vmatmul.mubr.msk.f32.vlgmr.msra.gmra.mrb[2].mxu0 %vm63_vm1, %v221_v30 }
 0x2c3   :  { %v301_v32 = vpop.f32.mrb[2].mxu0 }
 0x2c4   :  { %v302_v33 = vadd.f32 %v343_v31, %v301_v32  ;;  %v394_v34 = vpop.f32.mrb[3].mxu0 }
 0x2c6   :  { %422 = vtanh.f32 %v302_v33  ;;  %v318_v35 = vmax.f32 %v302_v33, -10.0 }
 0x2c8   :  { %v319_v36 = vmin.f32 %v318_v35, 2.0 }
 0x2ca   :  { %v320_v37 = vmul.f32 1.442695, %v319_v36 }
 0x2cc   :  { %424 = vpow2.f32 %v320_v37 }
 0x2d0   :  { %v423_v39 = vpop.eup %422 }
 0x2d1   :  { %v312_v41 = vmul.f32 %v423_v39, %v345_v38 }
 0x2d3   :  { %v317_v42 = vadd.f32 %v346_v40, %v312_v41 }
 0x2d5   :  { %323 = vst.msk [vmem:[%s581_s3] sm:$0xff] %vm322_vm2, %v317_v42 }
 0x2d6   :  { %v425_v43 = vpop.eup %424 }
 0x2d7   :  { %325 = vrot.lane.b32.xlu0 %v425_v43, %s504_s26 }
 0x349   :  { %v326_v44 = vpop.permute.xlu0 %325 }
 0x34a   :  { %328 = vst.msk [vmem:[%s582_s4] sm:$0xff] %vm322_vm2, %v326_v44 }
 0x34b   :  { %337 = vsyncpa [#allocation3], 1 }
 0x34c   :  { %338 = vsyncpa [#allocation5], 1 }

</bundles_post_ra>
